<compile_context>
chip_gen: v7x
topology: tpu7x:2x2x1
jax: 0.10.0
libtpu: 0.0.40
codegen_flags: <defaults>
</compile_context>

<pallas_src>
import functools

import numpy as np
import jax
import jax.numpy as jnp
from jax.experimental import pallas as pl
from jax.experimental.pallas import tpu as pltpu

_LANES = 128
_MAX_BLOCK_ROWS = 2048  # 2048 * 128 * 4 B = 1 MiB output block


def _as_i32(u: int) -> int:
    """Reinterpret a 32-bit unsigned literal as a Python int in int32 range."""
    u &= 0xFFFFFFFF
    return u - (1 << 32) if u >= (1 << 31) else u


_MIX1 = _as_i32(0x7FEB352D)   # lowbias32 multipliers
_MIX2 = _as_i32(0x846CA68B)
_GOLD = _as_i32(0x9E3779B9)   # golden-ratio seed mixer


def _round_up(x: int, m: int) -> int:
    return ((x + m - 1) // m) * m


def _srl(x, k: int):
    """Logical right shift for int32 (jnp's >> is arithmetic for signed ints)."""
    return jnp.bitwise_and(jnp.right_shift(x, k), (1 << (32 - k)) - 1)


def _mix32(x):
    """lowbias32-style avalanche mixer; all plain int32 VPU ops (wraps mod 2^32)."""
    x = jnp.bitwise_xor(x, _srl(x, 16))
    x = x * _MIX1
    x = jnp.bitwise_xor(x, _srl(x, 15))
    x = x * _MIX2
    x = jnp.bitwise_xor(x, _srl(x, 16))
    return x


def _bits_to_open_unit(bits):
    """Top 24 bits -> uniform in (0, 1); never exactly 0, so log() is safe."""
    m = _srl(bits, 8).astype(jnp.float32)
    return (m + jnp.float32(0.5)) * jnp.float32(1.0 / (1 << 24))


def _gaussian_init_kernel(seed_ref, o_ref):
    block_rows, lanes = o_ref.shape
    half = block_rows // 2

    # Global "pair" index: one (u1, u2) uniform pair produces two outputs.
    row = jax.lax.broadcasted_iota(jnp.int32, (half, lanes), 0)
    col = jax.lax.broadcasted_iota(jnp.int32, (half, lanes), 1)
    pair = pl.program_id(0) * (half * lanes) + row * lanes + col

    # Counter-based PRNG: hash(global index, seed).  Folding program_id into
    # the counter keeps every grid block (and every core under megacore
    # sharding) on an independent stream without re-seeding anything.
    c0 = pair * 2 + seed_ref[0] * _GOLD
    u1 = _bits_to_open_unit(_mix32(c0))
    u2 = _bits_to_open_unit(_mix32(c0 + 1))

    # Box-Muller, emitting BOTH outputs so log/sqrt are shared by cos & sin.
    r = jnp.sqrt(jnp.float32(-2.0) * jnp.log(u1))
    theta = jnp.float32(2.0 * np.pi) * u2
    o_ref[0:half, :] = (r * jnp.cos(theta)).astype(o_ref.dtype)
    o_ref[half:block_rows, :] = (r * jnp.sin(theta)).astype(o_ref.dtype)


@functools.partial(jax.jit, static_argnames=("batch_size", "state_shape"))
def gaussian_state_init(inputs, seed, *, batch_size: int, state_shape):
    """Pallas equivalent of GaussianStateInit.forward.

    `inputs` (the conditional input) is ignored by design, exactly like the
    PyTorch module. `seed` is an int32 scalar controlling the draw.
    """
    del inputs  # ignored by design
    out_shape = (batch_size,) + tuple(state_shape)
    n = int(np.prod(out_shape))

    # Lane-dense flat slab (rows, 128); rows a multiple of the block height.
    rows = -(-n // _LANES)
    block_rows = min(_MAX_BLOCK_ROWS, _round_up(rows, 8))
    rows_padded = _round_up(rows, block_rows)
    grid = (rows_padded // block_rows,)

    seed_arr = jnp.asarray(seed, jnp.int32).reshape((1,))

    flat = pl.pallas_call(
        _gaussian_init_kernel,
        out_shape=jax.ShapeDtypeStruct((rows_padded, _LANES), jnp.float32),
        grid_spec=pltpu.PrefetchScalarGridSpec(
            num_scalar_prefetch=1,
            grid=grid,
            in_specs=[],
            out_specs=pl.BlockSpec((block_rows, _LANES),
                                   lambda i, seed_ref: (i, 0)),
        ),
        compiler_params=pltpu.CompilerParams(
            dimension_semantics=("parallel",)),
        cost_estimate=pl.CostEstimate(
            flops=32 * rows_padded * _LANES,
            transcendentals=2 * rows_padded * _LANES,
            bytes_accessed=rows_padded * _LANES * 4,
        ),
    )(seed_arr)

    # Contiguous row-major reshape in the wrapper (free) -> [batch, *shape].
    return flat.reshape(-1)[:n].reshape(out_shape)


if __name__ == "__main__":
    # Module config: shape = (num_slots, slot_dim) = (8, 32); batch_size = 2.
    state_shape = (8, 32)
    batch_size = 2

    key = jax.random.PRNGKey(0)
    k_in, k_seed = jax.random.split(key)

    # Dummy conditional input (ignored by the module, by design).
    dummy_inputs = jax.random.normal(k_in, (batch_size, 4, 16, 16), jnp.float32)
    seed = jax.random.randint(k_seed, (), 0, 2**31 - 1, dtype=jnp.int32)

    out = gaussian_state_init(
        dummy_inputs, seed, batch_size=batch_size, state_shape=state_shape
    )
    out = jax.block_until_ready(out)

    assert out.shape == (batch_size,) + state_shape, out.shape
    assert out.dtype == jnp.float32, out.dtype
    assert bool(jnp.all(jnp.isfinite(out)))

    # Loose distribution sanity checks (512 samples of N(0,1)).
    mean = float(jnp.mean(out))
    std = float(jnp.std(out))
    assert abs(mean) < 0.3, mean
    assert 0.7 < std < 1.3, std

    # Different seeds give different draws.
    out2 = gaussian_state_init(
        dummy_inputs, seed + 1, batch_size=batch_size, state_shape=state_shape
    )
    assert bool(jnp.any(out != out2))

    print("KERNEL_OK")
</pallas_src>

<mosaic_0001>
module attributes {stable_mosaic.version = 11 : i64} {
  func.func @_gaussian_init_kernel(%arg0: i32, %arg1: memref<1xi32, #tpu.memory_space<smem>>, %arg2: memref<8x128xf32, #tpu.memory_space<vmem>>) attributes {dimension_semantics = [#tpu.dimension_semantics<parallel>], iteration_bounds = array<i64: 1>, scalar_prefetch = 1 : i64, scratch_operands = 0 : i64, tpu.core_type = #tpu.core_type<tc>, window_params = [{transform_indices = @transform_0, window_bounds = array<i64: 8, 128>}]} {
    %0 = tpu.iota {dimensions = array<i32: 0>} : vector<4x128xi32>
    %1 = tpu.iota {dimensions = array<i32: 1>} : vector<4x128xi32>
    %c512_i32 = arith.constant 512 : i32
    %2 = arith.muli %arg0, %c512_i32 : i32
    %c128_i32 = arith.constant 128 : i32
    %3 = vector.broadcast %c128_i32 : i32 to vector<4x128xi32>
    %4 = arith.muli %0, %3 : vector<4x128xi32>
    %5 = vector.broadcast %2 : i32 to vector<4x128xi32>
    %6 = arith.addi %5, %4 : vector<4x128xi32>
    %7 = arith.addi %6, %1 : vector<4x128xi32>
    %c2_i32 = arith.constant 2 : i32
    %8 = vector.broadcast %c2_i32 : i32 to vector<4x128xi32>
    %9 = arith.muli %7, %8 : vector<4x128xi32>
    %c0 = arith.constant 0 : index
    %10 = memref.load %arg1[%c0] : memref<1xi32, #tpu.memory_space<smem>>
    %c-1640531527_i32 = arith.constant -1640531527 : i32
    %11 = arith.muli %10, %c-1640531527_i32 : i32
    %12 = vector.broadcast %11 : i32 to vector<4x128xi32>
    %13 = arith.addi %9, %12 : vector<4x128xi32>
    %c16_i32 = arith.constant 16 : i32
    %14 = vector.broadcast %c16_i32 : i32 to vector<4x128xi32>
    %15 = arith.shrsi %13, %14 : vector<4x128xi32>
    %c65535_i32 = arith.constant 65535 : i32
    %16 = vector.broadcast %c65535_i32 : i32 to vector<4x128xi32>
    %17 = arith.andi %15, %16 : vector<4x128xi32>
    %18 = arith.xori %13, %17 : vector<4x128xi32>
    %c2146121005_i32 = arith.constant 2146121005 : i32
    %19 = vector.broadcast %c2146121005_i32 : i32 to vector<4x128xi32>
    %20 = arith.muli %18, %19 : vector<4x128xi32>
    %c15_i32 = arith.constant 15 : i32
    %21 = vector.broadcast %c15_i32 : i32 to vector<4x128xi32>
    %22 = arith.shrsi %20, %21 : vector<4x128xi32>
    %c131071_i32 = arith.constant 131071 : i32
    %23 = vector.broadcast %c131071_i32 : i32 to vector<4x128xi32>
    %24 = arith.andi %22, %23 : vector<4x128xi32>
    %25 = arith.xori %20, %24 : vector<4x128xi32>
    %c-2073254261_i32 = arith.constant -2073254261 : i32
    %26 = vector.broadcast %c-2073254261_i32 : i32 to vector<4x128xi32>
    %27 = arith.muli %25, %26 : vector<4x128xi32>
    %c16_i32_0 = arith.constant 16 : i32
    %28 = vector.broadcast %c16_i32_0 : i32 to vector<4x128xi32>
    %29 = arith.shrsi %27, %28 : vector<4x128xi32>
    %c65535_i32_1 = arith.constant 65535 : i32
    %30 = vector.broadcast %c65535_i32_1 : i32 to vector<4x128xi32>
    %31 = arith.andi %29, %30 : vector<4x128xi32>
    %32 = arith.xori %27, %31 : vector<4x128xi32>
    %c8_i32 = arith.constant 8 : i32
    %33 = vector.broadcast %c8_i32 : i32 to vector<4x128xi32>
    %34 = arith.shrsi %32, %33 : vector<4x128xi32>
    %c16777215_i32 = arith.constant 16777215 : i32
    %35 = vector.broadcast %c16777215_i32 : i32 to vector<4x128xi32>
    %36 = arith.andi %34, %35 : vector<4x128xi32>
    %37 = arith.sitofp %36 : vector<4x128xi32> to vector<4x128xf32>
    %cst = arith.constant 5.000000e-01 : f32
    %38 = vector.broadcast %cst : f32 to vector<4x128xf32>
    %39 = arith.addf %37, %38 : vector<4x128xf32>
    %cst_2 = arith.constant 5.96046448E-8 : f32
    %40 = vector.broadcast %cst_2 : f32 to vector<4x128xf32>
    %41 = arith.mulf %39, %40 : vector<4x128xf32>
    %c1_i32 = arith.constant 1 : i32
    %42 = vector.broadcast %c1_i32 : i32 to vector<4x128xi32>
    %43 = arith.addi %13, %42 : vector<4x128xi32>
    %c16_i32_3 = arith.constant 16 : i32
    %44 = vector.broadcast %c16_i32_3 : i32 to vector<4x128xi32>
    %45 = arith.shrsi %43, %44 : vector<4x128xi32>
    %c65535_i32_4 = arith.constant 65535 : i32
    %46 = vector.broadcast %c65535_i32_4 : i32 to vector<4x128xi32>
    %47 = arith.andi %45, %46 : vector<4x128xi32>
    %48 = arith.xori %43, %47 : vector<4x128xi32>
    %c2146121005_i32_5 = arith.constant 2146121005 : i32
    %49 = vector.broadcast %c2146121005_i32_5 : i32 to vector<4x128xi32>
    %50 = arith.muli %48, %49 : vector<4x128xi32>
    %c15_i32_6 = arith.constant 15 : i32
    %51 = vector.broadcast %c15_i32_6 : i32 to vector<4x128xi32>
    %52 = arith.shrsi %50, %51 : vector<4x128xi32>
    %c131071_i32_7 = arith.constant 131071 : i32
    %53 = vector.broadcast %c131071_i32_7 : i32 to vector<4x128xi32>
    %54 = arith.andi %52, %53 : vector<4x128xi32>
    %55 = arith.xori %50, %54 : vector<4x128xi32>
    %c-2073254261_i32_8 = arith.constant -2073254261 : i32
    %56 = vector.broadcast %c-2073254261_i32_8 : i32 to vector<4x128xi32>
    %57 = arith.muli %55, %56 : vector<4x128xi32>
    %c16_i32_9 = arith.constant 16 : i32
    %58 = vector.broadcast %c16_i32_9 : i32 to vector<4x128xi32>
    %59 = arith.shrsi %57, %58 : vector<4x128xi32>
    %c65535_i32_10 = arith.constant 65535 : i32
    %60 = vector.broadcast %c65535_i32_10 : i32 to vector<4x128xi32>
    %61 = arith.andi %59, %60 : vector<4x128xi32>
    %62 = arith.xori %57, %61 : vector<4x128xi32>
    %c8_i32_11 = arith.constant 8 : i32
    %63 = vector.broadcast %c8_i32_11 : i32 to vector<4x128xi32>
    %64 = arith.shrsi %62, %63 : vector<4x128xi32>
    %c16777215_i32_12 = arith.constant 16777215 : i32
    %65 = vector.broadcast %c16777215_i32_12 : i32 to vector<4x128xi32>
    %66 = arith.andi %64, %65 : vector<4x128xi32>
    %67 = arith.sitofp %66 : vector<4x128xi32> to vector<4x128xf32>
    %cst_13 = arith.constant 5.000000e-01 : f32
    %68 = vector.broadcast %cst_13 : f32 to vector<4x128xf32>
    %69 = arith.addf %67, %68 : vector<4x128xf32>
    %cst_14 = arith.constant 5.96046448E-8 : f32
    %70 = vector.broadcast %cst_14 : f32 to vector<4x128xf32>
    %71 = arith.mulf %69, %70 : vector<4x128xf32>
    %72 = math.log %41 : vector<4x128xf32>
    %cst_15 = arith.constant -2.000000e+00 : f32
    %73 = vector.broadcast %cst_15 : f32 to vector<4x128xf32>
    %74 = arith.mulf %73, %72 : vector<4x128xf32>
    %75 = math.sqrt %74 : vector<4x128xf32>
    %cst_16 = arith.constant 6.28318548 : f32
    %76 = vector.broadcast %cst_16 : f32 to vector<4x128xf32>
    %77 = arith.mulf %76, %71 : vector<4x128xf32>
    %78 = math.cos %77 : vector<4x128xf32>
    %79 = arith.mulf %75, %78 : vector<4x128xf32>
    %c0_17 = arith.constant 0 : index
    %c0_18 = arith.constant 0 : index
    %80 = vector.load %arg2[%c0_17, %c0_18] : memref<8x128xf32, #tpu.memory_space<vmem>>, vector<4x128xf32>
    tpu.vector_store %arg2[%c0_17, %c0_18], %79 {strides = array<i32>} : memref<8x128xf32, #tpu.memory_space<vmem>>, vector<4x128xf32>,
    %81 = math.sin %77 : vector<4x128xf32>
    %82 = arith.mulf %75, %81 : vector<4x128xf32>
    %c4 = arith.constant 4 : index
    %c0_19 = arith.constant 0 : index
    %83 = vector.load %arg2[%c4, %c0_19] : memref<8x128xf32, #tpu.memory_space<vmem>>, vector<4x128xf32>
    tpu.vector_store %arg2[%c4, %c0_19], %82 {strides = array<i32>} : memref<8x128xf32, #tpu.memory_space<vmem>>, vector<4x128xf32>,
    return
  }
  func.func @transform_0(%arg0: i32, %arg1: memref<1xi32, #tpu.memory_space<smem>>) -> (i32, i32) {
    %c0_i32 = arith.constant 0 : i32
    %c0_i32_0 = arith.constant 0 : i32
    return %arg0, %c0_i32 : i32, i32
  }
}

</mosaic_0001>

<bundles_post_ra>
// kernel: gaussian_state_init.1
= control target key start
LH: loop header
LB: loop body
LE: loop exit
PB: predicated region body
PF: predicated region fallthrough
CT: control target
= control target key end

     0   :  { %v7_v0 = vlaneseq  ;;  %v314_v38 = vmov 683565275   ;;  %v315_v40 = vmov 2475754826   ;;  %v316_v42 = vmov 2131351028   ;;  %s363_s0 = inlined_call_operand.<no memory space> [shape: s32[1], index: 0, kind: input, shape index: {}]   ;;  %s364_s1 = inlined_call_operand.vmem [shape: f32[8,128], index: 1, kind: output, shape index: {}]  }
   0x1   :  { %s18_s8 = smul.u32 2654435769, %s363_s0  ;;  %v317_v45 = vmov 2102212464   ;;  %v318_v47 = vmov 920167782  }
   0x2   :  { %v8_v1 = vshrl.u32 %v7_v0, 7  ;;  %v10_v2 = vand.u32 127, %v7_v0  ;;  %v319_v55 = vmov 1326507024  }
   0x3   :  { %v19_v5 = vstv %s18_s8 }
   0x4   :  { %v12_v3 = vmul.u32 128, %v8_v1 }
   0x6   :  { %v15_v4 = vadd.s32 %v12_v3, %v10_v2 }
   0x8   :  { %v16_v6 = vmul.u32 2, %v15_v4 }
   0xa   :  { %v20_v7 = vadd.s32 %v19_v5, %v16_v6 }
   0xc   :  { %v37_v8 = vadd.s32 1, %v20_v7  ;;  %v280_v17 = vshrl.u32 %v20_v7, 16 }
   0xe   :  { %v284_v9 = vshrl.u32 %v37_v8, 16  ;;  %v23_v20 = vxor.u32 %v280_v17, %v20_v7 }
  0x10   :  { %v40_v10 = vxor.u32 %v284_v9, %v37_v8  ;;  %v24_v23 = vmul.u32 2146121005, %v23_v20 }
  0x12   :  { %v41_v11 = vmul.u32 2146121005, %v40_v10  ;;  %v281_v26 = vshrl.u32 %v24_v23, 15 }
  0x14   :  { %v285_v12 = vshrl.u32 %v41_v11, 15  ;;  %v27_v30 = vxor.u32 %v281_v26, %v24_v23 }
  0x16   :  { %v44_v13 = vxor.u32 %v285_v12, %v41_v11  ;;  %v28_v34 = vmul.u32 2221713035, %v27_v30 }
  0x18   :  { %v45_v14 = vmul.u32 2221713035, %v44_v13  ;;  %v282_v49 = vshrl.u32 %v28_v34, 16 }
  0x1a   :  { %v286_v15 = vshrl.u32 %v45_v14, 16  ;;  %v31_v2 = vxor.u32 %v282_v49, %v28_v34 }
  0x1c   :  { %v48_v16 = vxor.u32 %v286_v15, %v45_v14  ;;  %v283_v13 = vshrl.u32 %v31_v2, 8 }
  0x1e   :  { %v287_v18 = vshrl.u32 %v48_v16, 8 }
  0x20   :  { %v51_v19 = vcvt.s32.f32 %v287_v18  ;;  %v34_v18 = vcvt.s32.f32 %v283_v13 }
  0x22   :  { %v52_v21 = vadd.f32 0.5, %v51_v19 }
  0x24   :  { %v53_v22 = vmul.f32 5.9604645e-08, %v52_v21 }
  0x26   :  { %v333_v24 = vmul.f32 6.2831855, %v53_v22  ;;  %v35_v22 = vadd.f32 0.5, %v34_v18 }
  0x28   :  { %v68_v25 = vand.u32 2139095040, %v333_v24  ;;  %v65_v29 = vand.u32 2147483647, %v333_v24  ;;  %v36_v26 = vmul.f32 5.9604645e-08, %v35_v22  ;;  %vm67_vm7 = vcmp.lt.s32.totalorder %v333_v24, 0 }
  0x2a   :  { %v69_v27 = vshrl.u32 %v68_v25, 23  ;;  %v72_v32 = vand.u32 8388607, %v65_v29  ;;  %306 = vlog2.f32 %v36_v26  ;;  %vm66_vm8 = vcmp.le.f32.partialorder %v65_v29, 0.7853982 }
  0x2c   :  { %v288_v28 = vadd.s32 4294967169, %v69_v27  ;;  %v73_v44 = vor.u32 8388608, %v72_v32 }
  0x2e   :  { %v75_v31 = vadd.s32 1, %v288_v28  ;;  %v113_v62 = vshll.u32 %v73_v44, 8 }
  0x30   :  { %vm76_vm0 = vcmp.gt.s32.totalorder %v75_v31, 0 }
  0x31   :  { %v77_v33 = vsel %vm76_vm0, %v75_v31, 0 }
  0x32   :  { %v79_v35 = vand.u32 31, %v77_v33  ;;  %v78_v36 = vshrl.u32 %v77_v33, 5 }
  0x34   :  { %v80_v37 = vsub.s32 32, %v79_v35  ;;  %v82_v39 = vshll.u32 %v314_v38, %v79_v35  ;;  %v85_v41 = vshll.u32 %v315_v40, %v79_v35  ;;  %v88_v43 = vshll.u32 %v316_v42, %v79_v35 }
  0x35   :  { %v91_v46 = vshll.u32 %v317_v45, %v79_v35  ;;  %v94_v48 = vshll.u32 %v318_v47, %v79_v35  ;;  %vm97_vm1 = vcmp.lt.s32.totalorder %v78_v36, 1  ;;  %vm100_vm2 = vcmp.lt.s32.totalorder %v78_v36, 4  ;;  %v307_v35 = vpop.eup %306 }
  0x36   :  { %v83_v50 = vshrl.u32 %v315_v40, %v80_v37  ;;  %v86_v51 = vshrl.u32 %v316_v42, %v80_v37  ;;  %v89_v52 = vshrl.u32 %v317_v45, %v80_v37  ;;  %v81_v53 = vshrl.u32 %v314_v38, %v80_v37 }
  0x37   :  { %v92_v54 = vshrl.u32 %v318_v47, %v80_v37  ;;  %v95_v56 = vshrl.u32 %v319_v55, %v80_v37  ;;  %vm99_vm3 = vcmp.lt.s32.totalorder %v78_v36, 3  ;;  %vm98_vm4 = vcmp.lt.s32.totalorder %v78_v36, 2 }
  0x38   :  { %v84_v57 = vor.u32 %v83_v50, %v82_v39  ;;  %v87_v58 = vor.u32 %v86_v51, %v85_v41  ;;  %v90_v59 = vor.u32 %v89_v52, %v88_v43  ;;  %v55_v40 = vmul.f32 0.6931472, %v307_v35 }
  0x39   :  { %v93_v60 = vor.u32 %v92_v54, %v91_v46  ;;  %v96_v61 = vor.u32 %v95_v56, %v94_v48 }
  0x3a   :  { %v102_v63 = vsel %vm100_vm2, %v90_v59, 2102212464  ;;  %v105_v0 = vsel %vm97_vm1, %v84_v57, %v87_v58  ;;  %v109_v1 = vsel %vm97_vm1, %v87_v58, %v90_v59  ;;  %v101_v5 = vsel %vm97_vm1, %v81_v53, %v84_v57 }
  0x3b   :  { %v106_v3 = vsel %vm100_vm2, %v93_v60, 920167782  ;;  %v110_v4 = vsel %vm100_vm2, %v96_v61, 1326507024  ;;  %v103_v6 = vsel %vm99_vm3, %v87_v58, %v102_v63  ;;  %v56_v45 = vmul.f32 -2.0, %v55_v40 }
  0x3c   :  { %v107_v7 = vsel %vm99_vm3, %v90_v59, %v106_v3  ;;  %v111_v8 = vsel %vm99_vm3, %v93_v60, %v110_v4  ;;  %v104_v14 = vsel %vm98_vm4, %v101_v5, %v103_v6  ;;  %vm157_vm1 = vweird.f32 %v333_v24 }
  0x3d   :  { %v108_v9 = vsel %vm98_vm4, %v105_v0, %v107_v7  ;;  %v112_v10 = vsel %vm98_vm4, %v109_v1, %v111_v8  ;;  %v120_v17 = vmul.u32 %v113_v62, %v104_v14  ;;  %308 = vrsqrt.f32 %v56_v45 }
  0x3e   :  { %v342_v11 = vmul.u32.u64.low %v113_v62, %v112_v10  ;;  %v343_v12 = vmul.u32.u64.high %v113_v62, %v112_v10, %v342_v11  ;;  %v345_v15 = vmul.u32.u64.low %v113_v62, %v108_v9  ;;  %v346_v16 = vmul.u32.u64.high %v113_v62, %v108_v9, %v345_v15 }
  0x3f   :  { %vm59_vm9 = vcmp.eq.f32.partialorder %v56_v45, inf  ;;  %vm61_vm10 = vcmp.eq.f32.partialorder %v56_v45, 0.0  ;;  %v62_v62 = vand.u32 2147483648, %v56_v45 }
  0x40   :  { %vm122_vm5 = vc.u32 %v343_v12, %v345_v15  ;;  %v123_v19 = vadd.s32 1, %v346_v16  ;;  %v121_v34 = vadd.s32 %v345_v15, %v343_v12 }
  0x42   :  { %v124_v20 = vsel %vm122_vm5, %v123_v19, %v346_v16 }
  0x43   :  { %v125_v21 = vadd.s32 %v124_v20, %v120_v17 }
  0x45   :  { %v126_v23 = vadd.s32 536870912, %v125_v21 }
  0x47   :  { %v127_v25 = vshrl.u32 %v126_v23, 30  ;;  %v309_v57 = vpop.eup %308 }
  0x48   :  { %v58_v60 = vmul.f32 %v309_v57, %v56_v45 }
  0x49   :  { %v128_v27 = vshll.u32 %v127_v25, 30  ;;  %v151_v49 = vsub.s32 4, %v127_v25 }
  0x4a   :  { %v60_v63 = vsel %vm59_vm9, %v56_v45, %v58_v60 }
  0x4b   :  { %v129_v28 = vsub.s32 %v125_v21, %v128_v27  ;;  %v152_v52 = vsel %vm67_vm7, %v151_v49, %v127_v25  ;;  %v63_v4 = vsel %vm61_vm10, %v62_v62, %v60_v63 }
  0x4c   :  { %v154_v55 = vsel %vm66_vm8, 0, %v152_v52 }
  0x4d   :  { %v131_v30 = vsub.s32 0, %v129_v28  ;;  %v263_v56 = vadd.s32 3, %v154_v55  ;;  %v158_v58 = vand.u32 3, %v154_v55 }
  0x4f   :  { %v289_v31 = vmin.u32 %v131_v30, %v129_v28  ;;  %v264_v59 = vand.u32 3, %v263_v56  ;;  %vm163_vm11 = vcmp.eq.s32.totalorder %v158_v58, 2  ;;  %vm160_vm13 = vcmp.eq.s32.totalorder %v158_v58, 0 }
  0x50   :  { %vm159_vm15 = vcmp.lt.s32.totalorder %v158_v58, 2 }
  0x51   :  { %v133_v32 = vclz %v289_v31  ;;  %vm269_vm12 = vcmp.eq.s32.totalorder %v264_v59, 2  ;;  %vm266_vm14 = vcmp.eq.s32.totalorder %v264_v59, 0  ;;  %vm265_vm0 = vcmp.lt.s32.totalorder %v264_v59, 2 }
  0x53   :  { %v290_v33 = vadd.s32 4294967294, %v133_v32 }
  0x55   :  { %vm291_vm6 = vcmp.lt.s32.totalorder %v290_v33, 0 }
  0x56   :  { %v136_v36 = vsel %vm291_vm6, 0, %v290_v33 }
  0x57   :  { %v137_v37 = vsub.s32 32, %v136_v36  ;;  %v138_v38 = vshll.u32 %v129_v28, %v136_v36  ;;  %v141_v39 = vsub.s32 4294967266, %v136_v36 }
  0x59   :  { %v139_v41 = vshrl.u32 %v121_v34, %v137_v37  ;;  %v142_v42 = vadd.s32 127, %v141_v39 }
  0x5b   :  { %v140_v43 = vor.u32 %v139_v41, %v138_v38  ;;  %v143_v44 = vshll.u32 %v142_v42, 23 }
  0x5d   :  { %v144_v46 = vor.u32 4788187, %v143_v44  ;;  %v147_v47 = vcvt.s32.f32 %v140_v43 }
  0x5f   :  { %v145_v48 = vand.u32 2147483647, %v144_v46 }
  0x61   :  { %v148_v50 = vmul.f32 %v147_v47, %v145_v48 }
  0x63   :  { %v149_v51 = vxor.u32 2147483648, %v148_v50 }
  0x65   :  { %v150_v53 = vsel %vm67_vm7, %v149_v51, %v148_v50 }
  0x66   :  { %v153_v54 = vsel %vm66_vm8, %v333_v24, %v150_v53 }
  0x67   :  { %310 = vcosq.f32 %v153_v54 }
  0x68   :  { %312 = vsinq.f32 %v153_v54 }
  0x71   :  { %v311_v61 = vpop.eup %310 }
  0x72   :  { %v313_v29 = vpop.eup %312  ;;  %v164_v0 = vxor.u32 2147483648, %v311_v61 }
  0x73   :  { %v161_v1 = vxor.u32 2147483648, %v313_v29 }
  0x74   :  { %v165_v2 = vsel %vm163_vm11, %v164_v0, %v313_v29  ;;  %v271_v3 = vsel %vm269_vm12, %v164_v0, %v313_v29 }
  0x75   :  { %v162_v5 = vsel %vm160_vm13, %v311_v61, %v161_v1  ;;  %v268_v6 = vsel %vm266_vm14, %v311_v61, %v161_v1 }
  0x76   :  { %v166_v7 = vsel %vm159_vm15, %v162_v5, %v165_v2  ;;  %v272_v8 = vsel %vm265_vm0, %v268_v6, %v271_v3 }
  0x77   :  { %v167_v9 = vsel %vm157_vm1, nan, %v166_v7  ;;  %v273_v10 = vsel %vm157_vm1, nan, %v272_v8 }
  0x78   :  { %v168_v11 = vmul.f32 %v167_v9, %v63_v4  ;;  %v274_v12 = vmul.f32 %v273_v10, %v63_v4 }
  0x7a   :  { %169 = vst [vmem:[%s364_s1] sm:$0xf] %v168_v11  ;;  %275 = vst [vmem:[%s364_s1 + $0x4] sm:$0xf] %v274_v12 }

</bundles_post_ra>
